<compile_context>
chip_gen: v7x
topology: tpu7x:2x2x1
jax: 0.10.0
libtpu: 0.0.40
codegen_flags: <defaults>
</compile_context>

<pallas_src>
import functools

import jax
import jax.numpy as jnp
from jax import lax
from jax.experimental import pallas as pl
from jax.experimental.pallas import tpu as pltpu


def _round_up(x, m):
    return ((x + m - 1) // m) * m


def _sublane_multiple(itemsize):
    # packed-sublane tile is (8,128) f32 / (16,128) bf16 / (32,128) int8
    return {4: 8, 2: 16, 1: 32}.get(int(itemsize), 8)


def _int_pow(x, k):
    """x**k for a static Python int k >= 1 via repeated squaring (VPU muls only)."""
    acc = None
    base = x
    while k:
        if k & 1:
            acc = base if acc is None else acc * base
        k >>= 1
        if k:
            base = base * base
    return acc


def _pick_pack_factor(nc, hw, itemsize, min_row_bytes=512, max_packed_lanes=512):
    """Pack g pooling rows per lane-row when a single row's contiguous HBM extent
    (hw*itemsize bytes) is small, so the DMA moves >=~512 B per row."""
    if nc <= 1 or hw * itemsize >= min_row_bytes:
        return 1
    g_max = max(1, min(nc, max_packed_lanes // hw))
    for g in range(g_max, 1, -1):
        if nc % g == 0:            # g must divide nc for the reshape to be free
            return g
    return 1


def _pick_tile_rows(rows, row_len, itemsize, vmem_bytes_per_buffer=4 * 1024 * 1024):
    """Row tile for double-buffered BlockSpecs.

    ~4 MiB/buffer keeps 2 double-buffered inputs well inside v7x's smaller scoped
    VMEM; the tile is rounded to the dtype's sublane multiple and the grid is split
    into >=2 balanced steps when there is enough work (so both v7x TCs get a share
    and the DMA pipeline has something to overlap)."""
    sub = _sublane_multiple(itemsize)
    lanes = _round_up(row_len, 128)
    vmem_rows = max(sub, (vmem_bytes_per_buffer // (lanes * itemsize)) // sub * sub)
    if rows < 2 * sub:
        return rows                               # full-dim block (always legal)
    half = _round_up((rows + 1) // 2, sub)
    return min(half, vmem_rows)


def _gem_kernel(p_ref, x_ref, o_ref, *, eps, hw, g, max_int_p, int_p_tol):
    """GeM-pool one (tile_rows, g*hw) packed row block over the lane (spatial) axis."""
    p = p_ref[0]                                   # already clamp_min(1)'d (SMEM)
    inv_p = 1.0 / p
    inv_hw = 1.0 / float(hw)

    # Clamp BEFORE any log so padded lanes / tail rows never feed NaN/-inf into
    # the masked reduction.
    x = jnp.maximum(x_ref[...].astype(jnp.float32), eps)

    if g > 1:
        # Segment-indicator matrix: column c sums lanes [c*hw, (c+1)*hw).
        ghw = g * hw
        seg = (lax.broadcasted_iota(jnp.int32, (ghw, g), 0) // hw
               == lax.broadcasted_iota(jnp.int32, (ghw, g), 1)).astype(jnp.float32)

    def finalize(xp, k_static=None):
        if g > 1:
            s = jnp.dot(xp, seg, preferred_element_type=jnp.float32)   # (tile, g), MXU (idle slot)
        else:
            s = jnp.sum(xp, axis=-1, keepdims=True)                    # (tile, 1), XLU
        mean = s * inv_hw                                              # full-window avg_pool2d
        if k_static == 1:
            root = mean
        elif k_static == 2:
            root = jnp.sqrt(mean)
        else:
            root = jnp.exp(jnp.log(mean) * inv_p)                      # tiny per-row EUP work
        o_ref[...] = root.astype(o_ref.dtype)

    p_round = jnp.round(p)
    is_int = jnp.logical_and(jnp.abs(p - p_round) <= int_p_tol,
                             p_round <= float(max_int_p))

    # Scalar switch: one branch per small integer exponent, each computes only the
    # multiplies it needs (repeated squaring).  EUP stays free on this path.
    for k in range(1, max_int_p + 1):
        @pl.when(jnp.logical_and(is_int, p_round == float(k)))
        def _(k=k):
            finalize(_int_pow(x, k), k_static=k)

    # General fallback: x > 0 so x**p == exp(p * log(x))  (EUP transcendentals).
    @pl.when(jnp.logical_not(is_int))
    def _():
        finalize(jnp.exp(p * jnp.log(x)))


def gem_pool2d(x, p, eps=1e-6, flatten=False, tile_rows=None,
               max_int_p=8, int_p_tol=1e-6):
    """x: (N, C, H, W) float array (f32 or bf16), p: (1,) learnable exponent."""
    N, C, H, W = x.shape
    nc, hw = N * C, H * W
    itemsize = x.dtype.itemsize

    # Parameter glue, matches `self.p.clamp_min(1)` in the PyTorch forward.
    p_eff = jnp.maximum(jnp.asarray(p, dtype=jnp.float32).reshape((1,)), 1.0)

    # Pack g pooling rows per lane-row when H*W is small (free reshape: NCHW data
    # is contiguous), so each DMA'd row is a long contiguous HBM extent.
    g = _pick_pack_factor(nc, hw, itemsize)
    rows, row_len = nc // g, g * hw
    x2 = x.reshape(rows, row_len)

    sub = _sublane_multiple(itemsize)
    if tile_rows is None:
        tile_rows = _pick_tile_rows(rows, row_len, itemsize)
    else:
        tile_rows = min(rows, max(sub, _round_up(int(tile_rows), sub)))
    grid = (pl.cdiv(rows, tile_rows),)

    cost = pl.CostEstimate(
        flops=6 * nc * hw + (2 * nc * hw * g if g > 1 else 0),
        transcendentals=2 * nc * hw + 2 * nc,          # worst case (non-integer p)
        bytes_accessed=int(x2.size) * itemsize + nc * itemsize + 4,
    )

    out = pl.pallas_call(
        functools.partial(_gem_kernel, eps=float(eps), hw=hw, g=g,
                          max_int_p=int(max_int_p), int_p_tol=float(int_p_tol)),
        out_shape=jax.ShapeDtypeStruct((rows, g), x.dtype),
        grid=grid,
        in_specs=[
            pl.BlockSpec(memory_space=pltpu.SMEM),                  # p scalar
            pl.BlockSpec((tile_rows, row_len), lambda i: (i, 0)),   # packed row-tile
        ],
        out_specs=pl.BlockSpec((tile_rows, g), lambda i: (i, 0)),
        compiler_params=pltpu.CompilerParams(
            dimension_semantics=("parallel",)),                     # 2 TCs on v7x
        cost_estimate=cost,
    )(p_eff, x2)

    out = out.reshape(N, C, 1, 1)
    if flatten:
        out = out.reshape(N, C)
    return out


def gem_pool2d_ref(x, p, eps=1e-6, flatten=False):
    """Pure-JAX reference for correctness checking."""
    p_eff = jnp.maximum(jnp.asarray(p, dtype=jnp.float32).reshape((1,)), 1.0)
    xc = jnp.maximum(x.astype(jnp.float32), eps)
    pooled = jnp.mean(xc ** p_eff, axis=(-2, -1), keepdims=True)
    out = (pooled ** (1.0 / p_eff)).astype(x.dtype)
    if flatten:
        out = out.reshape(x.shape[0], x.shape[1])
    return out


if __name__ == "__main__":
    key = jax.random.PRNGKey(0)
    k1, k2, k3 = jax.random.split(key, 3)

    # Deterministic parameter init, matching nn.Parameter(torch.ones(1) * 3)
    p3 = jnp.ones((1,), dtype=jnp.float32) * 3.0

    # 1) Lane-dense spatial (16*16 = 256), f32, integer-p fast path, single block.
    x1 = jax.random.normal(k1, (2, 4, 16, 16), dtype=jnp.float32)
    out1 = jax.block_until_ready(gem_pool2d(x1, p3, eps=1e-6))
    ref1 = gem_pool2d_ref(x1, p3, eps=1e-6)
    assert out1.shape == (2, 4, 1, 1), out1.shape
    assert jnp.allclose(out1, ref1, atol=1e-5, rtol=1e-5), (
        float(jnp.max(jnp.abs(out1 - ref1))))

    # 2) 7x7 head with bf16 activations: exercises the row-packing path (g=8,
    #    392-lane packed rows) with MXU segmented sums and bf16 sublane rounding.
    x2 = jax.random.normal(k2, (2, 24, 7, 7), dtype=jnp.bfloat16)
    out2 = jax.block_until_ready(gem_pool2d(x2, p3, eps=1e-6))
    ref2 = gem_pool2d_ref(x2, p3, eps=1e-6)
    assert out2.shape == (2, 24, 1, 1), out2.shape
    assert jnp.allclose(out2.astype(jnp.float32), ref2.astype(jnp.float32),
                        atol=2e-2, rtol=2e-2), (
        float(jnp.max(jnp.abs(out2.astype(jnp.float32) - ref2.astype(jnp.float32)))))

    # 3) Non-integer p (exp/log fallback), forced small tile -> multi-step grid with
    #    a ragged tail block (partial-block masking + pipelining), flatten=True.
    p_frac = jnp.ones((1,), dtype=jnp.float32) * 2.5
    x3 = jax.random.normal(k3, (2, 41, 16, 16), dtype=jnp.float32)
    out3 = jax.block_until_ready(gem_pool2d(x3, p_frac, eps=1e-6, flatten=True,
                                            tile_rows=16))
    ref3 = gem_pool2d_ref(x3, p_frac, eps=1e-6, flatten=True)
    assert out3.shape == (2, 41), out3.shape
    assert jnp.allclose(out3, ref3, atol=1e-4, rtol=1e-4), (
        float(jnp.max(jnp.abs(out3 - ref3))))

    # 4) p < 1 clamps to 1 (pure mean, k=1 branch).
    p_low = jnp.ones((1,), dtype=jnp.float32) * 0.5
    out4 = jax.block_until_ready(gem_pool2d(x1, p_low, eps=1e-6))
    ref4 = gem_pool2d_ref(x1, p_low, eps=1e-6)
    assert jnp.allclose(out4, ref4, atol=1e-5, rtol=1e-5), (
        float(jnp.max(jnp.abs(out4 - ref4))))

    print("KERNEL_OK")
</pallas_src>

<mosaic_0001>
module attributes {stable_mosaic.version = 11 : i64} {
  func.func @_gem_kernel(%arg0: i32, %arg1: memref<1xf32, #tpu.memory_space<smem>>, %arg2: memref<8x256xf32, #tpu.memory_space<vmem>>, %arg3: memref<8x1xf32, #tpu.memory_space<vmem>>) attributes {dimension_semantics = [#tpu.dimension_semantics<parallel>], iteration_bounds = array<i64: 1>, scalar_prefetch = 0 : i64, scratch_operands = 0 : i64, tpu.core_type = #tpu.core_type<tc>, window_params = [{transform_indices = @transform_0, window_bounds = array<i64: 1>}, {transform_indices = @transform_1, window_bounds = array<i64: 8, 256>}, {transform_indices = @transform_2, window_bounds = array<i64: 8, 1>}]} {
    %c0 = arith.constant 0 : index
    %0 = memref.load %arg1[%c0] : memref<1xf32, #tpu.memory_space<smem>>
    %cst = arith.constant 1.000000e+00 : f32
    %1 = arith.divf %cst, %0 : f32
    %c0_0 = arith.constant 0 : index
    %c0_1 = arith.constant 0 : index
    %2 = vector.load %arg2[%c0_0, %c0_1] : memref<8x256xf32, #tpu.memory_space<vmem>>, vector<8x256xf32>
    %cst_2 = arith.constant 9.99999997E-7 : f32
    %3 = vector.broadcast %cst_2 : f32 to vector<8x256xf32>
    %4 = arith.maximumf %2, %3 : vector<8x256xf32>
    %5 = math.roundeven %0 : f32
    %6 = arith.subf %0, %5 : f32
    %7 = math.absf %6 : f32
    %cst_3 = arith.constant 9.99999997E-7 : f32
    %8 = arith.cmpf ole, %7, %cst_3 : f32
    %cst_4 = arith.constant 8.000000e+00 : f32
    %9 = arith.cmpf ole, %5, %cst_4 : f32
    %10 = arith.andi %8, %9 : i1
    %cst_5 = arith.constant 1.000000e+00 : f32
    %11 = arith.cmpf oeq, %5, %cst_5 : f32
    %12 = arith.andi %10, %11 : i1
    %13 = arith.extui %12 : i1 to i32
    %c0_i32 = arith.constant 0 : i32
    %14 = arith.cmpi ne, %13, %c0_i32 : i32
    scf.if %14 {
      %cst_21 = arith.constant dense<0.000000e+00> : vector<8xf32>
      %46 = vector.multi_reduction <add>, %4, %cst_21 [1] : vector<8x256xf32> to vector<8xf32>
      %47 = vector.shape_cast %46 : vector<8xf32> to vector<8x1xf32>
      %cst_22 = arith.constant 3.906250e-03 : f32
      %48 = vector.broadcast %cst_22 : f32 to vector<8x1xf32>
      %49 = arith.mulf %47, %48 : vector<8x1xf32>
      %c0_23 = arith.constant 0 : index
      %c0_24 = arith.constant 0 : index
      %50 = vector.load %arg3[%c0_23, %c0_24] : memref<8x1xf32, #tpu.memory_space<vmem>>, vector<8x1xf32>
      tpu.vector_store %arg3[%c0_23, %c0_24], %49 {strides = array<i32>} : memref<8x1xf32, #tpu.memory_space<vmem>>, vector<8x1xf32>,
    } else {
    }
    %cst_6 = arith.constant 2.000000e+00 : f32
    %15 = arith.cmpf oeq, %5, %cst_6 : f32
    %16 = arith.andi %10, %15 : i1
    %17 = arith.extui %16 : i1 to i32
    %c0_i32_7 = arith.constant 0 : i32
    %18 = arith.cmpi ne, %17, %c0_i32_7 : i32
    scf.if %18 {
      %46 = arith.mulf %4, %4 : vector<8x256xf32>
      %cst_21 = arith.constant dense<0.000000e+00> : vector<8xf32>
      %47 = vector.multi_reduction <add>, %46, %cst_21 [1] : vector<8x256xf32> to vector<8xf32>
      %48 = vector.shape_cast %47 : vector<8xf32> to vector<8x1xf32>
      %cst_22 = arith.constant 3.906250e-03 : f32
      %49 = vector.broadcast %cst_22 : f32 to vector<8x1xf32>
      %50 = arith.mulf %48, %49 : vector<8x1xf32>
      %51 = math.sqrt %50 : vector<8x1xf32>
      %c0_23 = arith.constant 0 : index
      %c0_24 = arith.constant 0 : index
      %52 = vector.load %arg3[%c0_23, %c0_24] : memref<8x1xf32, #tpu.memory_space<vmem>>, vector<8x1xf32>
      tpu.vector_store %arg3[%c0_23, %c0_24], %51 {strides = array<i32>} : memref<8x1xf32, #tpu.memory_space<vmem>>, vector<8x1xf32>,
    } else {
    }
    %cst_8 = arith.constant 3.000000e+00 : f32
    %19 = arith.cmpf oeq, %5, %cst_8 : f32
    %20 = arith.andi %10, %19 : i1
    %21 = arith.extui %20 : i1 to i32
    %c0_i32_9 = arith.constant 0 : i32
    %22 = arith.cmpi ne, %21, %c0_i32_9 : i32
    scf.if %22 {
      %46 = arith.mulf %4, %4 : vector<8x256xf32>
      %47 = arith.mulf %4, %46 : vector<8x256xf32>
      %cst_21 = arith.constant dense<0.000000e+00> : vector<8xf32>
      %48 = vector.multi_reduction <add>, %47, %cst_21 [1] : vector<8x256xf32> to vector<8xf32>
      %49 = vector.shape_cast %48 : vector<8xf32> to vector<8x1xf32>
      %cst_22 = arith.constant 3.906250e-03 : f32
      %50 = vector.broadcast %cst_22 : f32 to vector<8x1xf32>
      %51 = arith.mulf %49, %50 : vector<8x1xf32>
      %52 = math.log %51 : vector<8x1xf32>
      %53 = vector.broadcast %1 : f32 to vector<8x1xf32>
      %54 = arith.mulf %52, %53 : vector<8x1xf32>
      %55 = math.exp %54 : vector<8x1xf32>
      %c0_23 = arith.constant 0 : index
      %c0_24 = arith.constant 0 : index
      %56 = vector.load %arg3[%c0_23, %c0_24] : memref<8x1xf32, #tpu.memory_space<vmem>>, vector<8x1xf32>
      tpu.vector_store %arg3[%c0_23, %c0_24], %55 {strides = array<i32>} : memref<8x1xf32, #tpu.memory_space<vmem>>, vector<8x1xf32>,
    } else {
    }
    %cst_10 = arith.constant 4.000000e+00 : f32
    %23 = arith.cmpf oeq, %5, %cst_10 : f32
    %24 = arith.andi %10, %23 : i1
    %25 = arith.extui %24 : i1 to i32
    %c0_i32_11 = arith.constant 0 : i32
    %26 = arith.cmpi ne, %25, %c0_i32_11 : i32
    scf.if %26 {
      %46 = arith.mulf %4, %4 : vector<8x256xf32>
      %47 = arith.mulf %46, %46 : vector<8x256xf32>
      %cst_21 = arith.constant dense<0.000000e+00> : vector<8xf32>
      %48 = vector.multi_reduction <add>, %47, %cst_21 [1] : vector<8x256xf32> to vector<8xf32>
      %49 = vector.shape_cast %48 : vector<8xf32> to vector<8x1xf32>
      %cst_22 = arith.constant 3.906250e-03 : f32
      %50 = vector.broadcast %cst_22 : f32 to vector<8x1xf32>
      %51 = arith.mulf %49, %50 : vector<8x1xf32>
      %52 = math.log %51 : vector<8x1xf32>
      %53 = vector.broadcast %1 : f32 to vector<8x1xf32>
      %54 = arith.mulf %52, %53 : vector<8x1xf32>
      %55 = math.exp %54 : vector<8x1xf32>
      %c0_23 = arith.constant 0 : index
      %c0_24 = arith.constant 0 : index
      %56 = vector.load %arg3[%c0_23, %c0_24] : memref<8x1xf32, #tpu.memory_space<vmem>>, vector<8x1xf32>
      tpu.vector_store %arg3[%c0_23, %c0_24], %55 {strides = array<i32>} : memref<8x1xf32, #tpu.memory_space<vmem>>, vector<8x1xf32>,
    } else {
    }
    %cst_12 = arith.constant 5.000000e+00 : f32
    %27 = arith.cmpf oeq, %5, %cst_12 : f32
    %28 = arith.andi %10, %27 : i1
    %29 = arith.extui %28 : i1 to i32
    %c0_i32_13 = arith.constant 0 : i32
    %30 = arith.cmpi ne, %29, %c0_i32_13 : i32
    scf.if %30 {
      %46 = arith.mulf %4, %4 : vector<8x256xf32>
      %47 = arith.mulf %46, %46 : vector<8x256xf32>
      %48 = arith.mulf %4, %47 : vector<8x256xf32>
      %cst_21 = arith.constant dense<0.000000e+00> : vector<8xf32>
      %49 = vector.multi_reduction <add>, %48, %cst_21 [1] : vector<8x256xf32> to vector<8xf32>
      %50 = vector.shape_cast %49 : vector<8xf32> to vector<8x1xf32>
      %cst_22 = arith.constant 3.906250e-03 : f32
      %51 = vector.broadcast %cst_22 : f32 to vector<8x1xf32>
      %52 = arith.mulf %50, %51 : vector<8x1xf32>
      %53 = math.log %52 : vector<8x1xf32>
      %54 = vector.broadcast %1 : f32 to vector<8x1xf32>
      %55 = arith.mulf %53, %54 : vector<8x1xf32>
      %56 = math.exp %55 : vector<8x1xf32>
      %c0_23 = arith.constant 0 : index
      %c0_24 = arith.constant 0 : index
      %57 = vector.load %arg3[%c0_23, %c0_24] : memref<8x1xf32, #tpu.memory_space<vmem>>, vector<8x1xf32>
      tpu.vector_store %arg3[%c0_23, %c0_24], %56 {strides = array<i32>} : memref<8x1xf32, #tpu.memory_space<vmem>>, vector<8x1xf32>,
    } else {
    }
    %cst_14 = arith.constant 6.000000e+00 : f32
    %31 = arith.cmpf oeq, %5, %cst_14 : f32
    %32 = arith.andi %10, %31 : i1
    %33 = arith.extui %32 : i1 to i32
    %c0_i32_15 = arith.constant 0 : i32
    %34 = arith.cmpi ne, %33, %c0_i32_15 : i32
    scf.if %34 {
      %46 = arith.mulf %4, %4 : vector<8x256xf32>
      %47 = arith.mulf %46, %46 : vector<8x256xf32>
      %48 = arith.mulf %46, %47 : vector<8x256xf32>
      %cst_21 = arith.constant dense<0.000000e+00> : vector<8xf32>
      %49 = vector.multi_reduction <add>, %48, %cst_21 [1] : vector<8x256xf32> to vector<8xf32>
      %50 = vector.shape_cast %49 : vector<8xf32> to vector<8x1xf32>
      %cst_22 = arith.constant 3.906250e-03 : f32
      %51 = vector.broadcast %cst_22 : f32 to vector<8x1xf32>
      %52 = arith.mulf %50, %51 : vector<8x1xf32>
      %53 = math.log %52 : vector<8x1xf32>
      %54 = vector.broadcast %1 : f32 to vector<8x1xf32>
      %55 = arith.mulf %53, %54 : vector<8x1xf32>
      %56 = math.exp %55 : vector<8x1xf32>
      %c0_23 = arith.constant 0 : index
      %c0_24 = arith.constant 0 : index
      %57 = vector.load %arg3[%c0_23, %c0_24] : memref<8x1xf32, #tpu.memory_space<vmem>>, vector<8x1xf32>
      tpu.vector_store %arg3[%c0_23, %c0_24], %56 {strides = array<i32>} : memref<8x1xf32, #tpu.memory_space<vmem>>, vector<8x1xf32>,
    } else {
    }
    %cst_16 = arith.constant 7.000000e+00 : f32
    %35 = arith.cmpf oeq, %5, %cst_16 : f32
    %36 = arith.andi %10, %35 : i1
    %37 = arith.extui %36 : i1 to i32
    %c0_i32_17 = arith.constant 0 : i32
    %38 = arith.cmpi ne, %37, %c0_i32_17 : i32
    scf.if %38 {
      %46 = arith.mulf %4, %4 : vector<8x256xf32>
      %47 = arith.mulf %4, %46 : vector<8x256xf32>
      %48 = arith.mulf %46, %46 : vector<8x256xf32>
      %49 = arith.mulf %47, %48 : vector<8x256xf32>
      %cst_21 = arith.constant dense<0.000000e+00> : vector<8xf32>
      %50 = vector.multi_reduction <add>, %49, %cst_21 [1] : vector<8x256xf32> to vector<8xf32>
      %51 = vector.shape_cast %50 : vector<8xf32> to vector<8x1xf32>
      %cst_22 = arith.constant 3.906250e-03 : f32
      %52 = vector.broadcast %cst_22 : f32 to vector<8x1xf32>
      %53 = arith.mulf %51, %52 : vector<8x1xf32>
      %54 = math.log %53 : vector<8x1xf32>
      %55 = vector.broadcast %1 : f32 to vector<8x1xf32>
      %56 = arith.mulf %54, %55 : vector<8x1xf32>
      %57 = math.exp %56 : vector<8x1xf32>
      %c0_23 = arith.constant 0 : index
      %c0_24 = arith.constant 0 : index
      %58 = vector.load %arg3[%c0_23, %c0_24] : memref<8x1xf32, #tpu.memory_space<vmem>>, vector<8x1xf32>
      tpu.vector_store %arg3[%c0_23, %c0_24], %57 {strides = array<i32>} : memref<8x1xf32, #tpu.memory_space<vmem>>, vector<8x1xf32>,
    } else {
    }
    %cst_18 = arith.constant 8.000000e+00 : f32
    %39 = arith.cmpf oeq, %5, %cst_18 : f32
    %40 = arith.andi %10, %39 : i1
    %41 = arith.extui %40 : i1 to i32
    %c0_i32_19 = arith.constant 0 : i32
    %42 = arith.cmpi ne, %41, %c0_i32_19 : i32
    scf.if %42 {
      %46 = arith.mulf %4, %4 : vector<8x256xf32>
      %47 = arith.mulf %46, %46 : vector<8x256xf32>
      %48 = arith.mulf %47, %47 : vector<8x256xf32>
      %cst_21 = arith.constant dense<0.000000e+00> : vector<8xf32>
      %49 = vector.multi_reduction <add>, %48, %cst_21 [1] : vector<8x256xf32> to vector<8xf32>
      %50 = vector.shape_cast %49 : vector<8xf32> to vector<8x1xf32>
      %cst_22 = arith.constant 3.906250e-03 : f32
      %51 = vector.broadcast %cst_22 : f32 to vector<8x1xf32>
      %52 = arith.mulf %50, %51 : vector<8x1xf32>
      %53 = math.log %52 : vector<8x1xf32>
      %54 = vector.broadcast %1 : f32 to vector<8x1xf32>
      %55 = arith.mulf %53, %54 : vector<8x1xf32>
      %56 = math.exp %55 : vector<8x1xf32>
      %c0_23 = arith.constant 0 : index
      %c0_24 = arith.constant 0 : index
      %57 = vector.load %arg3[%c0_23, %c0_24] : memref<8x1xf32, #tpu.memory_space<vmem>>, vector<8x1xf32>
      tpu.vector_store %arg3[%c0_23, %c0_24], %56 {strides = array<i32>} : memref<8x1xf32, #tpu.memory_space<vmem>>, vector<8x1xf32>,
    } else {
    }
    %true = arith.constant true
    %43 = arith.xori %10, %true : i1
    %44 = arith.extui %43 : i1 to i32
    %c0_i32_20 = arith.constant 0 : i32
    %45 = arith.cmpi ne, %44, %c0_i32_20 : i32
    scf.if %45 {
      %46 = math.log %4 : vector<8x256xf32>
      %47 = vector.broadcast %0 : f32 to vector<8x256xf32>
      %48 = arith.mulf %47, %46 : vector<8x256xf32>
      %49 = math.exp %48 : vector<8x256xf32>
      %cst_21 = arith.constant dense<0.000000e+00> : vector<8xf32>
      %50 = vector.multi_reduction <add>, %49, %cst_21 [1] : vector<8x256xf32> to vector<8xf32>
      %51 = vector.shape_cast %50 : vector<8xf32> to vector<8x1xf32>
      %cst_22 = arith.constant 3.906250e-03 : f32
      %52 = vector.broadcast %cst_22 : f32 to vector<8x1xf32>
      %53 = arith.mulf %51, %52 : vector<8x1xf32>
      %54 = math.log %53 : vector<8x1xf32>
      %55 = vector.broadcast %1 : f32 to vector<8x1xf32>
      %56 = arith.mulf %54, %55 : vector<8x1xf32>
      %57 = math.exp %56 : vector<8x1xf32>
      %c0_23 = arith.constant 0 : index
      %c0_24 = arith.constant 0 : index
      %58 = vector.load %arg3[%c0_23, %c0_24] : memref<8x1xf32, #tpu.memory_space<vmem>>, vector<8x1xf32>
      tpu.vector_store %arg3[%c0_23, %c0_24], %57 {strides = array<i32>} : memref<8x1xf32, #tpu.memory_space<vmem>>, vector<8x1xf32>,
    } else {
    }
    return
  }
  func.func @transform_0(%arg0: i32) -> i32 {
    %c0_i32 = arith.constant 0 : i32
    %c0_i32_0 = arith.constant 0 : i32
    return %c0_i32 : i32
  }
  func.func @transform_1(%arg0: i32) -> (i32, i32) {
    %c0_i32 = arith.constant 0 : i32
    %c0_i32_0 = arith.constant 0 : i32
    return %arg0, %c0_i32 : i32, i32
  }
  func.func @transform_2(%arg0: i32) -> (i32, i32) {
    %c0_i32 = arith.constant 0 : i32
    %c0_i32_0 = arith.constant 0 : i32
    return %arg0, %c0_i32 : i32, i32
  }
}

</mosaic_0001>

<bundles_post_ra>
// kernel: tpu_custom_call.1
= control target key start
LH: loop header
LB: loop body
LE: loop exit
PB: predicated region body
PF: predicated region fallthrough
CT: control target
= control target key end

     0   :  { %8 = vsyncpa [#allocation4], 0  ;;  %s311_s9 = smov [#allocation3]   ;;  %s480_s0 = inlined_call_operand.<no memory space> [shape: f32[1], index: 0, kind: input, shape index: {}]   ;;  %s481_s1 = inlined_call_operand.hbm [shape: f32[8,256], index: 1, kind: input, shape index: {}]   ;;  %s482_s2 = inlined_call_operand.vmem [shape: f32[8,1], index: 2, kind: output, shape index: {}]  }
   0x1   :  { %s17_s10 = sshll.u32 %s311_s9, 4  ;;  %s287_s13 = scalar_lea.hbm %s481_s1, 256  ;;  %s18_s10 = int_to_ptr.vmem [resolvable:$true] %s17_s10 }
   0x2   :  { %p288_p0 = scmp.ne.s32.totalorder %s481_s1, %s287_s13  ;;  %p291_p1 = scmp.lt.u32.totalorder %s287_s13, %s481_s1 }
   0x4   :  { %p293_p2 = pnand %p291_p1, %p288_p0 }
   0x6   :  { %296 = shalt.err (!%p293_p2)
}
   0x7   :  { %s297_s18 = scalar_lea.vmem %s18_s10, 256  ;;  %p302_p4 = scmp.lt.s32.totalorder %s18_s10, %s18_s10 }
   0x8   :  { %p298_p3 = scmp.ne.s32.totalorder %s18_s10, %s297_s18  ;;  %p303_p5 = scmp.lt.s32.totalorder %s297_s18, %s297_s18 }
   0xa   :  { %p304_p6 = por %p303_p5, %p302_p4 }
   0xc   :  { %p305_p7 = pnand %p304_p6, %p298_p3 }
   0xe   :  { %308 = shalt.err (!%p305_p7)
}
   0xf   :  { %20 = dma.hbm_to_vmem [thread:$0]  %s481_s1, 256, %s18_s10, [#allocation4]   ;;  %v342_v0 = vstv %s480_s0 }
  0x10   :  { %309 = dma.done.wait [#allocation4], 256  }
  0x11   :  { %310 = vsyncadd [#allocation4], 4294967040  ;;  %s32_s25 = scvt.f32.s32 %s480_s0  ;;  %247 = vrcp.f32 %v342_v0  ;;  %s35_s28 = sand.u32 2147483648, %s480_s0  ;;  %v28_v1 = vld [vmem:[#allocation3] sm:$0xff]  ;;  %v29_v2 = vld [vmem:[#allocation3 + $0x8] sm:$0xff] }
  0x12   :  { %s37_s1 = sand.u32 2147483647, %s480_s0  ;;  %v359_v3 = vmax.f32 %v28_v1, 1e-06  ;;  %v361_v4 = vmax.f32 %v29_v2, 1e-06 }
  0x13   :  { %s33_s3 = scvt.s32.f32 %s32_s25  ;;  %p38_p8 = scmp.lt.f32.partialorder %s37_s1, 2.1474836e+09 }
  0x15   :  { %s34_s4 = sand.u32 2147483647, %s33_s3 }
  0x16   :  { %s36_s5 = sor.u32 %s35_s28, %s34_s4 }
  0x17   :  { %s486_s5 = smov (!%p38_p8, %s36_s5), %s480_s0 }
  0x18   :  { %s40_s10 = ssub.f32 %s480_s0, %s486_s5  ;;  %p43_p9 = scmp.le.f32.partialorder %s486_s5, 8.0 }
  0x19   :  { %p46_p12 = scmp.eq.f32.partialorder %s486_s5, 1.0 }
  0x1a   :  { %s41_s11 = sand.u32 2147483647, %s40_s10 }
  0x1b   :  { %v248_v5 = vpop.eup %247  ;;  %p42_p10 = scmp.le.f32.partialorder %s41_s11, 1e-06 }
  0x1c   :  { %244 = vpush %v248_v5 }
  0x1d   :  { %p368_p11 = pnand %p43_p9, %p42_p10 }
  0x1f   :  { %p375_p13 = pneg %p368_p11 }
  0x21   :  { %p47_p0 = pnand %p46_p12, %p375_p13 }
  0x22   :  { %v51_v6 = vadd.f32 (!%p47_p0), %v361_v4, %v359_v3  ;;  %vm55_vm0 = vcmask (!%p47_p0), 7168  }
  0x24   :  { %52 = vadd.xlane.f32.xlu0 (!%p47_p0), %v51_v6 }
  0x47   :  { %50 = sbr.rel (%p47_p0) target bundleno = 181 (0xb5), region = 17 }
  0x4d   :  { %s381_s0 = spop %244 }
  0xb1   :  { %v53_v7 = vpop.xlane.xlu0 %52 }
  0xb2   :  { %v54_v8 = vmul.f32 0.00390625, %v53_v7 }
  0xb4   :  { %56 = vst.msk [vmem:[%s482_s2] sm:$0xff] %vm55_vm0, %v54_v8 }
  0xb5 PF:  { %p57_p1 = scmp.eq.f32.partialorder %s486_s5, 2.0 }
  0xb7   :  { %p58_p2 = pnand %p57_p1, %p375_p13 }
  0xb8   :  { %v62_v9 = vmul.f32 (!%p58_p2), %v359_v3, %v359_v3  ;;  %v63_v10 = vmul.f32 (!%p58_p2), %v361_v4, %v361_v4  ;;  %vm75_vm2 = vcmask (!%p58_p2), 7168  }
  0xb9   :  { %61 = sbr.rel (%p58_p2) target bundleno = 348 (0x15c), region = 21 }
  0xba   :  { %v64_v11 = vadd.f32 (!%p58_p2), %v63_v10, %v62_v9 }
  0xbc   :  { %65 = vadd.xlane.f32.xlu0 (!%p58_p2), %v64_v11 }
 0x149   :  { %v66_v12 = vpop.xlane.xlu0 %65 }
 0x14a   :  { %v67_v13 = vmul.f32 0.00390625, %v66_v12 }
 0x14c   :  { %249 = vrsqrt.f32 %v67_v13  ;;  %vm70_vm1 = vcmp.eq.f32.partialorder %v67_v13, inf  ;;  %v73_v16 = vand.u32 2147483648, %v67_v13  ;;  %vm72_vm3 = vcmp.eq.f32.partialorder %v67_v13, 0.0 }
 0x156   :  { %v250_v14 = vpop.eup %249 }
 0x157   :  { %v69_v15 = vmul.f32 %v250_v14, %v67_v13 }
 0x159   :  { %v71_v17 = vsel %vm70_vm1, %v67_v13, %v69_v15 }
 0x15a   :  { %v74_v18 = vsel %vm72_vm3, %v73_v16, %v71_v17 }
 0x15b   :  { %76 = vst.msk [vmem:[%s482_s2] sm:$0xff] %vm75_vm2, %v74_v18 }
 0x15c PF:  { %p77_p3 = scmp.eq.f32.partialorder %s486_s5, 3.0 }
 0x15e   :  { %p78_p4 = pnand %p77_p3, %p375_p13 }
 0x15f   :  { %v82_v19 = vmul.f32 (!%p78_p4), %v359_v3, %v359_v3  ;;  %v83_v20 = vmul.f32 (!%p78_p4), %v361_v4, %v361_v4  ;;  %v92_v27 = vstv (!%p78_p4), %s381_s0  ;;  %vm96_vm4 = vcmask (!%p78_p4), 7168  }
 0x160   :  { %81 = sbr.rel (%p78_p4) target bundleno = 530 (0x212), region = 25 }
 0x161   :  { %v84_v21 = vmul.f32 (!%p78_p4), %v82_v19, %v359_v3  ;;  %v85_v22 = vmul.f32 (!%p78_p4), %v83_v20, %v361_v4 }
 0x163   :  { %v86_v23 = vadd.f32 (!%p78_p4), %v85_v22, %v84_v21 }
 0x165   :  { %87 = vadd.xlane.f32.xlu0 (!%p78_p4), %v86_v23 }
 0x1f2   :  { %v88_v24 = vpop.xlane.xlu0 %87 }
 0x1f3   :  { %v89_v25 = vmul.f32 0.00390625, %v88_v24 }
 0x1f5   :  { %251 = vlog2.f32 %v89_v25 }
 0x1ff   :  { %v252_v26 = vpop.eup %251 }
 0x200   :  { %v91_v28 = vmul.f32 0.6931472, %v252_v26 }
 0x202   :  { %v93_v29 = vmul.f32 %v92_v27, %v91_v28 }
 0x204   :  { %v94_v30 = vmul.f32 1.442695, %v93_v29 }
 0x206   :  { %253 = vpow2.f32 %v94_v30 }
 0x210   :  { %v254_v31 = vpop.eup %253 }
 0x211   :  { %97 = vst.msk [vmem:[%s482_s2] sm:$0xff] %vm96_vm4, %v254_v31 }
 0x212 PF:  { %p98_p5 = scmp.eq.f32.partialorder %s486_s5, 4.0 }
 0x214   :  { %p99_p6 = pnand %p98_p5, %p375_p13 }
 0x215   :  { %v103_v32 = vmul.f32 (!%p99_p6), %v359_v3, %v359_v3  ;;  %v104_v33 = vmul.f32 (!%p99_p6), %v361_v4, %v361_v4  ;;  %v113_v40 = vstv (!%p99_p6), %s381_s0  ;;  %vm117_vm5 = vcmask (!%p99_p6), 7168  }
 0x216   :  { %102 = sbr.rel (%p99_p6) target bundleno = 712 (0x2c8), region = 29 }
 0x217   :  { %v105_v34 = vmul.f32 (!%p99_p6), %v103_v32, %v103_v32  ;;  %v106_v35 = vmul.f32 (!%p99_p6), %v104_v33, %v104_v33 }
 0x219   :  { %v107_v36 = vadd.f32 (!%p99_p6), %v106_v35, %v105_v34 }
 0x21b   :  { %108 = vadd.xlane.f32.xlu0 (!%p99_p6), %v107_v36 }
 0x2a8   :  { %v109_v37 = vpop.xlane.xlu0 %108 }
 0x2a9   :  { %v110_v38 = vmul.f32 0.00390625, %v109_v37 }
 0x2ab   :  { %255 = vlog2.f32 %v110_v38 }
 0x2b5   :  { %v256_v39 = vpop.eup %255 }
 0x2b6   :  { %v112_v41 = vmul.f32 0.6931472, %v256_v39 }
 0x2b8   :  { %v114_v42 = vmul.f32 %v113_v40, %v112_v41 }
 0x2ba   :  { %v115_v43 = vmul.f32 1.442695, %v114_v42 }
 0x2bc   :  { %257 = vpow2.f32 %v115_v43 }
 0x2c6   :  { %v258_v44 = vpop.eup %257 }
 0x2c7   :  { %118 = vst.msk [vmem:[%s482_s2] sm:$0xff] %vm117_vm5, %v258_v44 }
 0x2c8 PF:  { %p119_p7 = scmp.eq.f32.partialorder %s486_s5, 5.0 }
 0x2ca   :  { %p120_p8 = pnand %p119_p7, %p375_p13 }
 0x2cb   :  { %v124_v45 = vmul.f32 (!%p120_p8), %v359_v3, %v359_v3  ;;  %v125_v46 = vmul.f32 (!%p120_p8), %v361_v4, %v361_v4  ;;  %v136_v55 = vstv (!%p120_p8), %s381_s0  ;;  %vm140_vm6 = vcmask (!%p120_p8), 7168  }
 0x2cc   :  { %123 = sbr.rel (%p120_p8) target bundleno = 896 (0x380), region = 33 }
 0x2cd   :  { %v126_v47 = vmul.f32 (!%p120_p8), %v124_v45, %v124_v45  ;;  %v127_v48 = vmul.f32 (!%p120_p8), %v125_v46, %v125_v46 }
 0x2cf   :  { %v128_v49 = vmul.f32 (!%p120_p8), %v126_v47, %v359_v3  ;;  %v129_v50 = vmul.f32 (!%p120_p8), %v127_v48, %v361_v4 }
 0x2d1   :  { %v130_v51 = vadd.f32 (!%p120_p8), %v129_v50, %v128_v49 }
 0x2d3   :  { %131 = vadd.xlane.f32.xlu0 %v130_v51 }
 0x360   :  { %v132_v52 = vpop.xlane.xlu0 %131 }
 0x361   :  { %v133_v53 = vmul.f32 0.00390625, %v132_v52 }
 0x363   :  { %259 = vlog2.f32 %v133_v53 }
 0x36d   :  { %v260_v54 = vpop.eup %259 }
 0x36e   :  { %v135_v56 = vmul.f32 0.6931472, %v260_v54 }
 0x370   :  { %v137_v57 = vmul.f32 %v136_v55, %v135_v56 }
 0x372   :  { %v138_v58 = vmul.f32 1.442695, %v137_v57 }
 0x374   :  { %261 = vpow2.f32 %v138_v58 }
 0x37e   :  { %v262_v59 = vpop.eup %261 }
 0x37f   :  { %141 = vst.msk [vmem:[%s482_s2] sm:$0xff] %vm140_vm6, %v262_v59 }
 0x380 PF:  { %p142_p9 = scmp.eq.f32.partialorder %s486_s5, 6.0 }
 0x382   :  { %p143_p10 = pnand %p142_p9, %p375_p13 }
 0x383   :  { %v147_v60 = vmul.f32 (!%p143_p10), %v359_v3, %v359_v3  ;;  %v148_v61 = vmul.f32 (!%p143_p10), %v361_v4, %v361_v4  ;;  %v159_v9 = vstv (!%p143_p10), %s381_s0  ;;  %vm163_vm7 = vcmask (!%p143_p10), 7168  }
 0x384   :  { %146 = sbr.rel (%p143_p10) target bundleno = 1080 (0x438), region = 37 }
 0x385   :  { %v149_v62 = vmul.f32 (!%p143_p10), %v147_v60, %v147_v60  ;;  %v150_v63 = vmul.f32 (!%p143_p10), %v148_v61, %v148_v61 }
 0x387   :  { %v151_v1 = vmul.f32 (!%p143_p10), %v149_v62, %v147_v60  ;;  %v152_v2 = vmul.f32 (!%p143_p10), %v150_v63, %v148_v61 }
 0x389   :  { %v153_v5 = vadd.f32 (!%p143_p10), %v152_v2, %v151_v1 }
 0x38b   :  { %154 = vadd.xlane.f32.xlu0 %v153_v5 }
 0x418   :  { %v155_v6 = vpop.xlane.xlu0 %154 }
 0x419   :  { %v156_v7 = vmul.f32 0.00390625, %v155_v6 }
 0x41b   :  { %263 = vlog2.f32 %v156_v7 }
 0x425   :  { %v264_v8 = vpop.eup %263 }
 0x426   :  { %v158_v10 = vmul.f32 0.6931472, %v264_v8 }
 0x428   :  { %v160_v11 = vmul.f32 %v159_v9, %v158_v10 }
 0x42a   :  { %v161_v12 = vmul.f32 1.442695, %v160_v11 }
 0x42c   :  { %265 = vpow2.f32 %v161_v12 }
 0x436   :  { %v266_v13 = vpop.eup %265 }
 0x437   :  { %164 = vst.msk [vmem:[%s482_s2] sm:$0xff] %vm163_vm7, %v266_v13 }
 0x438 PF:  { %p165_p12 = scmp.eq.f32.partialorder %s486_s5, 7.0 }
 0x43a   :  { %p166_p0 = pnand %p165_p12, %p375_p13 }
 0x43b   :  { %v170_v14 = vmul.f32 (!%p166_p0), %v359_v3, %v359_v3  ;;  %v171_v15 = vmul.f32 (!%p166_p0), %v361_v4, %v361_v4  ;;  %v184_v26 = vstv (!%p166_p0), %s381_s0  ;;  %vm188_vm8 = vcmask (!%p166_p0), 7168  }
 0x43c   :  { %169 = sbr.rel (%p166_p0) target bundleno = 1264 (0x4f0), region = 41 }
 0x43d   :  { %v172_v16 = vmul.f32 (!%p166_p0), %v170_v14, %v359_v3  ;;  %v173_v17 = vmul.f32 (!%p166_p0), %v171_v15, %v361_v4  ;;  %v174_v18 = vmul.f32 (!%p166_p0), %v170_v14, %v170_v14  ;;  %v175_v19 = vmul.f32 (!%p166_p0), %v171_v15, %v171_v15 }
 0x43f   :  { %v176_v20 = vmul.f32 (!%p166_p0), %v174_v18, %v172_v16  ;;  %v177_v21 = vmul.f32 (!%p166_p0), %v175_v19, %v173_v17 }
 0x441   :  { %v178_v22 = vadd.f32 (!%p166_p0), %v177_v21, %v176_v20 }
 0x443   :  { %179 = vadd.xlane.f32.xlu0 %v178_v22 }
 0x4d0   :  { %v180_v23 = vpop.xlane.xlu0 %179 }
 0x4d1   :  { %v181_v24 = vmul.f32 0.00390625, %v180_v23 }
 0x4d3   :  { %267 = vlog2.f32 %v181_v24 }
 0x4dd   :  { %v268_v25 = vpop.eup %267 }
 0x4de   :  { %v183_v27 = vmul.f32 0.6931472, %v268_v25 }
 0x4e0   :  { %v185_v28 = vmul.f32 %v184_v26, %v183_v27 }
 0x4e2   :  { %v186_v29 = vmul.f32 1.442695, %v185_v28 }
 0x4e4   :  { %269 = vpow2.f32 %v186_v29 }
 0x4ee   :  { %v270_v30 = vpop.eup %269 }
 0x4ef   :  { %189 = vst.msk [vmem:[%s482_s2] sm:$0xff] %vm188_vm8, %v270_v30 }
 0x4f0 PF:  { %p190_p1 = scmp.eq.f32.partialorder %s486_s5, 8.0 }
 0x4f2   :  { %p191_p2 = pnand %p190_p1, %p375_p13 }
 0x4f3   :  { %v195_v31 = vmul.f32 (!%p191_p2), %v359_v3, %v359_v3  ;;  %v196_v32 = vmul.f32 (!%p191_p2), %v361_v4, %v361_v4  ;;  %v207_v41 = vstv (!%p191_p2), %s381_s0  ;;  %vm211_vm9 = vcmask (!%p191_p2), 7168  }
 0x4f4   :  { %194 = sbr.rel (%p191_p2) target bundleno = 1448 (0x5a8), region = 45 }
 0x4f5   :  { %v197_v33 = vmul.f32 (!%p191_p2), %v195_v31, %v195_v31  ;;  %v198_v34 = vmul.f32 (!%p191_p2), %v196_v32, %v196_v32 }
 0x4f7   :  { %v199_v35 = vmul.f32 (!%p191_p2), %v197_v33, %v197_v33  ;;  %v200_v36 = vmul.f32 (!%p191_p2), %v198_v34, %v198_v34 }
 0x4f9   :  { %v201_v37 = vadd.f32 (!%p191_p2), %v200_v36, %v199_v35 }
 0x4fb   :  { %202 = vadd.xlane.f32.xlu0 %v201_v37 }
 0x588   :  { %v203_v38 = vpop.xlane.xlu0 %202 }
 0x589   :  { %v204_v39 = vmul.f32 0.00390625, %v203_v38 }
 0x58b   :  { %271 = vlog2.f32 %v204_v39 }
 0x595   :  { %v272_v40 = vpop.eup %271 }
 0x596   :  { %v206_v42 = vmul.f32 0.6931472, %v272_v40 }
 0x598   :  { %v208_v43 = vmul.f32 %v207_v41, %v206_v42 }
 0x59a   :  { %v209_v44 = vmul.f32 1.442695, %v208_v43 }
 0x59c   :  { %273 = vpow2.f32 %v209_v44 }
 0x5a6   :  { %v274_v45 = vpop.eup %273 }
 0x5a7   :  { %212 = vst.msk [vmem:[%s482_s2] sm:$0xff] %vm211_vm9, %v274_v45 }
 0x5a8 PF:  { %215 = sbr.rel (!%p368_p11) target bundleno = 1652 (0x674), region = 49  ;;  %275 = vlog2.f32 (%p368_p11), %v359_v3  ;;  %v233_v58 = vstv (%p368_p11), %s381_s0  ;;  %vm237_vm10 = vcmask (%p368_p11), 7168  }
 0x5a9   :  { %277 = vlog2.f32 (%p368_p11), %v361_v4 }
 0x5b2   :  { %v276_v46 = vpop.eup %275 }
 0x5b3   :  { %v278_v47 = vpop.eup %277  ;;  %v217_v48 = vmul.f32 0.6931472, %v276_v46 }
 0x5b4   :  { %v219_v49 = vmul.f32 0.6931472, %v278_v47 }
 0x5b5   :  { %v221_v50 = vmul.f32 %v217_v48, %v342_v0 }
 0x5b6   :  { %v222_v51 = vmul.f32 %v219_v49, %v342_v0 }
 0x5b7   :  { %v223_v52 = vmul.f32 1.442695, %v221_v50 }
 0x5b8   :  { %v225_v53 = vmul.f32 1.442695, %v222_v51 }
 0x5b9   :  { %279 = vpow2.f32 %v223_v52 }
 0x5ba   :  { %281 = vpow2.f32 %v225_v53 }
 0x5c3   :  { %v280_v54 = vpop.eup %279 }
 0x5c4   :  { %v282_v55 = vpop.eup %281 }
 0x5c5   :  { %v227_v56 = vadd.f32 %v282_v55, %v280_v54 }
 0x5c7   :  { %228 = vadd.xlane.f32.xlu0 %v227_v56 }
 0x654   :  { %v229_v3 = vpop.xlane.xlu0 %228 }
 0x655   :  { %v230_v57 = vmul.f32 0.00390625, %v229_v3 }
 0x657   :  { %283 = vlog2.f32 %v230_v57 }
 0x661   :  { %v284_v4 = vpop.eup %283 }
 0x662   :  { %v232_v59 = vmul.f32 0.6931472, %v284_v4 }
 0x664   :  { %v234_v60 = vmul.f32 %v233_v58, %v232_v59 }
 0x666   :  { %v235_v61 = vmul.f32 1.442695, %v234_v60 }
 0x668   :  { %285 = vpow2.f32 %v235_v61 }
 0x672   :  { %v286_v62 = vpop.eup %285 }
 0x673   :  { %238 = vst.msk [vmem:[%s482_s2] sm:$0xff] %vm237_vm10, %v286_v62 }
 0x674 PF:  { %243 = vsyncpa [#allocation4], 1 }

</bundles_post_ra>
